<compile_context>
chip_gen: v7x
topology: tpu7x:2x2x1
jax: 0.10.0
libtpu: 0.0.40
codegen_flags: <defaults>
</compile_context>

<pallas_src>
import jax
import jax.numpy as jnp
from jax.experimental import pallas as pl
from jax.experimental.pallas import tpu as pltpu


# ----------------------------- kernel body ---------------------------------

def _unary_conv_kernel(x_ref, w_ref, o_ref):
    # MXU matmul of the current [tm, d_in] feature tile with the resident
    # [d_in, d_out] weight; accumulate in f32, cast to the output dtype.
    o_ref[...] = jnp.dot(
        x_ref[...], w_ref[...], preferred_element_type=jnp.float32
    ).astype(o_ref.dtype)


# ----------------------------- tiling helpers -------------------------------

_LANE = 128
_SUBLANE = 8
_TM_MAX = 8192          # multi-MiB steps; past this, DMA fully hides overhead
_TM_MIN = _SUBLANE
_WEIGHT_SINGLE_BUFFER_BYTES = 2 * 1024 * 1024  # stop double-buffering big weights


def _round_up(x: int, m: int) -> int:
    return ((x + m - 1) // m) * m


def _vmem_capacity_bytes() -> int:
    try:
        return int(pltpu.get_tpu_info().vmem_capacity_bytes)
    except Exception:
        return 64 * 1024 * 1024  # conservative (v7x per-TC physical VMEM)


def _num_tensorcores() -> int:
    # v7x exposes 2 TensorCores per chip to one Pallas call; v5e/v6e have 1.
    try:
        kind = jax.devices()[0].device_kind.lower()
    except Exception:
        return 1
    return 2 if ("v7" in kind or "7x" in kind) else 1


def _choose_tm(n: int, d_in: int, d_out: int, itemsize: int,
               vmem_limit: int, weight_buffers: int) -> int:
    if n <= _SUBLANE:
        # Single block equal to the full row extent (legal: equals array dim).
        return max(int(n), 1)
    # Per grid step: double-buffered feature + output tiles, plus the resident
    # weight buffers, inside ~70% of the VMEM limit (headroom for internals).
    weight_bytes = weight_buffers * d_in * d_out * itemsize
    bytes_per_row = 2 * (d_in + d_out) * itemsize
    budget = max(int(0.7 * vmem_limit) - weight_bytes, _SUBLANE * bytes_per_row)
    tm = min(budget // bytes_per_row, _TM_MAX)
    # On multi-TC chips aim for >=2 grid steps per core so each core's
    # auto-pipeline has DMA/compute overlap; on 1-TC chips prefer fewer steps.
    ncores = _num_tensorcores()
    if ncores > 1 and n >= 2 * ncores * _SUBLANE:
        tm = min(tm, _round_up(pl.cdiv(n, 2 * ncores), _SUBLANE))
    # Keep the block sublane-aligned and not larger than the row count, so the
    # only boundary handling is the standard partial last block.
    tm = min(tm, (n // _SUBLANE) * _SUBLANE)
    tm = max(_TM_MIN, (tm // _SUBLANE) * _SUBLANE)
    return int(tm)


# ------------------------------- wrapper ------------------------------------

def unary_conv(features: jax.Array,
               weight: jax.Array,
               *,
               tm: int | None = None,
               compute_dtype=None,
               out_dtype=None) -> jax.Array:
    """UnaryConv forward: features [N, d_in] @ weight [d_in, d_out] -> [N, d_out].

    compute_dtype: optional operand dtype (e.g. jnp.bfloat16). Operands are
      only cast if they are not already that dtype -- for real bandwidth
      savings cast at the producer (pass bf16 inputs) instead of relying on
      the wrapper cast. Accumulation is always f32 on the MXU.
    out_dtype: output dtype (defaults to the original features dtype).
    """
    N, d_in = features.shape
    d_in_w, d_out = weight.shape
    if d_in != d_in_w:
        raise ValueError(f"feature dim {d_in} != weight rows {d_in_w}")

    orig_dtype = features.dtype
    if compute_dtype is not None:
        if features.dtype != compute_dtype:
            features = features.astype(compute_dtype)
        if weight.dtype != compute_dtype:
            weight = weight.astype(compute_dtype)
    if out_dtype is None:
        out_dtype = orig_dtype

    in_itemsize = jnp.dtype(features.dtype).itemsize
    w_itemsize = jnp.dtype(weight.dtype).itemsize
    out_itemsize = jnp.dtype(out_dtype).itemsize

    vmem_cap = _vmem_capacity_bytes()
    vmem_limit = max(32 * 1024 * 1024, min(int(0.75 * vmem_cap), 100 * 1024 * 1024))

    # Resident weight: constant index_map; drop to a single buffer when it is
    # big enough for double-buffering to matter for the VMEM budget.
    weight_bytes = d_in * d_out * w_itemsize
    single_buffer_weight = weight_bytes >= _WEIGHT_SINGLE_BUFFER_BYTES
    weight_buffers = 1 if single_buffer_weight else 2

    if tm is None:
        tm = _choose_tm(N, d_in, d_out, max(in_itemsize, out_itemsize),
                        vmem_limit, weight_buffers)
    tm = int(max(1, min(tm, max(N, 1))))
    if tm < N:
        tm = max(_TM_MIN, (tm // _SUBLANE) * _SUBLANE)

    grid = (pl.cdiv(N, tm),)

    w_spec_kwargs = {}
    if single_buffer_weight:
        w_spec_kwargs["pipeline_mode"] = pl.Buffered(1)
    in_specs = [
        # Row tile of features; d_in is the full array dim (lane-legal).
        pl.BlockSpec((tm, d_in), lambda i: (i, 0)),
        # Full weight with a constant block index: fetched once, resident.
        pl.BlockSpec((d_in, d_out), lambda i: (0, 0), **w_spec_kwargs),
    ]

    cost = pl.CostEstimate(
        flops=2 * N * d_in * d_out,
        transcendentals=0,
        bytes_accessed=(N * d_in * in_itemsize
                        + d_in * d_out * w_itemsize
                        + N * d_out * out_itemsize),
    )

    out = pl.pallas_call(
        _unary_conv_kernel,
        out_shape=jax.ShapeDtypeStruct((N, d_out), out_dtype),
        grid_spec=pltpu.PrefetchScalarGridSpec(
            num_scalar_prefetch=0,
            grid=grid,
            in_specs=in_specs,
            out_specs=pl.BlockSpec((tm, d_out), lambda i: (i, 0)),
        ),
        compiler_params=pltpu.CompilerParams(
            dimension_semantics=("parallel",),
            vmem_limit_bytes=vmem_limit,
        ),
        cost_estimate=cost,
    )(features, weight)

    return out


# ------------------------------ init + demo ---------------------------------

def xavier_normal(key, shape, dtype=jnp.float32):
    # torch.nn.init.xavier_normal_: std = gain * sqrt(2 / (fan_in + fan_out)), gain=1
    fan_in, fan_out = shape
    std = (2.0 / (fan_in + fan_out)) ** 0.5
    return std * jax.random.normal(key, shape, dtype=dtype)


if __name__ == "__main__":
    num_inputs, num_outputs = 32, 64
    N = 200  # deliberately not a multiple of 8 (exercises the boundary block)

    key = jax.random.PRNGKey(0)
    k_feat, k_w = jax.random.split(key)

    features = jax.random.normal(k_feat, (N, num_inputs), dtype=jnp.float32)
    weight = xavier_normal(k_w, (num_inputs, num_outputs))

    # Default f32 path: exact torch.matmul semantics.
    out = jax.block_until_ready(unary_conv(features, weight))
    ref = features @ weight
    assert out.shape == (N, num_outputs)
    assert out.dtype == features.dtype
    assert jnp.allclose(out, ref, atol=1e-5, rtol=1e-5)

    # bf16 path: cast at the source (not inside the wrapper) so HBM traffic is
    # actually halved; MXU accumulation stays f32.
    feats_bf16 = features.astype(jnp.bfloat16)
    w_bf16 = weight.astype(jnp.bfloat16)
    out_bf16 = jax.block_until_ready(
        unary_conv(feats_bf16, w_bf16, out_dtype=jnp.float32)
    )
    assert out_bf16.shape == (N, num_outputs)
    assert jnp.allclose(out_bf16, ref, atol=5e-2, rtol=5e-2)

    print("KERNEL_OK")
</pallas_src>

<mosaic_0001>
module attributes {stable_mosaic.version = 11 : i64} {
  func.func @_unary_conv_kernel(%arg0: i32, %arg1: memref<200x32xf32, #tpu.memory_space<vmem>>, %arg2: memref<32x64xf32, #tpu.memory_space<vmem>>, %arg3: memref<200x64xf32, #tpu.memory_space<vmem>>) attributes {dimension_semantics = [#tpu.dimension_semantics<parallel>], iteration_bounds = array<i64: 1>, scalar_prefetch = 0 : i64, scratch_operands = 0 : i64, tpu.core_type = #tpu.core_type<tc>, window_params = [{transform_indices = @transform_0, window_bounds = array<i64: 200, 32>}, {pipeline_mode = #tpu.pipeline_mode<synchronous>, transform_indices = @transform_1, window_bounds = array<i64: 32, 64>}, {transform_indices = @transform_2, window_bounds = array<i64: 200, 64>}]} {
    %c0 = arith.constant 0 : index
    %c0_0 = arith.constant 0 : index
    %0 = vector.load %arg1[%c0, %c0_0] : memref<200x32xf32, #tpu.memory_space<vmem>>, vector<200x32xf32>
    %c0_1 = arith.constant 0 : index
    %c0_2 = arith.constant 0 : index
    %1 = vector.load %arg2[%c0_1, %c0_2] : memref<32x64xf32, #tpu.memory_space<vmem>>, vector<32x64xf32>
    %cst = arith.constant dense<0.000000e+00> : vector<200x64xf32>
    %2 = tpu.matmul %0, %1, %cst {dimension_numbers = #tpu.dot_dimension_numbers<[1], [0], [0], [1], [0, 0, 1, 1], [], []>} : vector<200x32xf32>, vector<32x64xf32>, vector<200x64xf32> -> vector<200x64xf32>
    %c0_3 = arith.constant 0 : index
    %c0_4 = arith.constant 0 : index
    %3 = vector.load %arg3[%c0_3, %c0_4] : memref<200x64xf32, #tpu.memory_space<vmem>>, vector<200x64xf32>
    tpu.vector_store %arg3[%c0_3, %c0_4], %2 {strides = array<i32>} : memref<200x64xf32, #tpu.memory_space<vmem>>, vector<200x64xf32>,
    return
  }
  func.func @transform_0(%arg0: i32) -> (i32, i32) {
    %c0_i32 = arith.constant 0 : i32
    %c0_i32_0 = arith.constant 0 : i32
    return %arg0, %c0_i32 : i32, i32
  }
  func.func @transform_1(%arg0: i32) -> (i32, i32) {
    %c0_i32 = arith.constant 0 : i32
    %c0_i32_0 = arith.constant 0 : i32
    %c0_i32_1 = arith.constant 0 : i32
    return %c0_i32, %c0_i32_0 : i32, i32
  }
  func.func @transform_2(%arg0: i32) -> (i32, i32) {
    %c0_i32 = arith.constant 0 : i32
    %c0_i32_0 = arith.constant 0 : i32
    return %arg0, %c0_i32 : i32, i32
  }
}

</mosaic_0001>

<bundles_post_ra>
// kernel: tpu_custom_call.1
= control target key start
LH: loop header
LB: loop body
LE: loop exit
PB: predicated region body
PF: predicated region fallthrough
CT: control target
= control target key end

     0   :  { %v486_v0 = vmov 0.0|0.0   ;;  %vm487_vm0 = vmmov 0   ;;  %v488_v6 = vmov 0.0   ;;  %vm40_vm1 = vcmask 261120   ;;  %s766_s1 = inlined_call_operand.vmem [shape: f32[32,64], index: 1, kind: input, shape index: {}]   ;;  %s767_s0 = inlined_call_operand.vmem [shape: f32[200,32], index: 0, kind: input, shape index: {}]   ;;  %s768_s2 = inlined_call_operand.vmem [shape: f32[200,64], index: 2, kind: output, shape index: {}]  }
   0x1   :  { %473 = vmatprep.subr.bf16.mxu0 %v486_v0  ;;  %v36_v1 = vld [vmem:[%s766_s1] sm:$0xff]  ;;  %v37_v2 = vld [vmem:[%s766_s1 + $0x8] sm:$0xff]  ;;  %479 = vmatprep.subr.bf16.mxu1 %v486_v0  ;;  %v38_v3 = vld [vmem:[%s766_s1 + $0x10] sm:$0xff]  ;;  %vm306_vm2 = vcmask 523264  }
   0x2   :  { %v474_v4 = vpack.c.bf16 %v37_v2, %v36_v1  ;;  %v39_v5 = vld [vmem:[%s766_s1 + $0x18] sm:$0xff]  ;;  %398 = vmatprep.mubr.msk.f32.mxu0 %vm487_vm0, %v488_v6  ;;  %437 = vmatprep.mubr.msk.f32.mxu1 %vm487_vm0, %v488_v6  ;;  %v11_v8 = vld [vmem:[%s767_s0] sm:$0xff]  ;;  %v24_v9 = vld [vmem:[%s767_s0 + $0x68] sm:$0xff] }
   0x3   :  { %v477_v7 = vpack.c.bf16 %v39_v5, %v38_v3  ;;  %v12_v10 = vld [vmem:[%s767_s0 + $0x8] sm:$0xff]  ;;  %v25_v11 = vld [vmem:[%s767_s0 + $0x70] sm:$0xff]  ;;  %v26_v13 = vld [vmem:[%s767_s0 + $0x78] sm:$0xff] }
   0x4   :  { %475 = vmatpush3.bf16.msra.mxu0 %v474_v4  ;;  %481 = vmatpush3.bf16.msra.mxu1 %v474_v4  ;;  %v13_v12 = vld [vmem:[%s767_s0 + $0x10] sm:$0xff]  ;;  %v14_v14 = vld [vmem:[%s767_s0 + $0x18] sm:$0xff]  ;;  %v27_v15 = vld [vmem:[%s767_s0 + $0x80] sm:$0xff] }
   0x5   :  { %476 = vmatprep.subr.bf16.mxu0 %v486_v0  ;;  %480 = vmatprep.subr.bf16.mxu1 %v486_v0  ;;  %v15_v16 = vld [vmem:[%s767_s0 + $0x20] sm:$0xff]  ;;  %v28_v17 = vld [vmem:[%s767_s0 + $0x88] sm:$0xff]  ;;  %v29_v19 = vld [vmem:[%s767_s0 + $0x90] sm:$0xff] }
   0x6   :  { %v16_v18 = vld [vmem:[%s767_s0 + $0x28] sm:$0xff]  ;;  %v17_v20 = vld [vmem:[%s767_s0 + $0x30] sm:$0xff]  ;;  %v30_v21 = vld [vmem:[%s767_s0 + $0x98] sm:$0xff] }
   0x7   :  { %v18_v22 = vld [vmem:[%s767_s0 + $0x38] sm:$0xff]  ;;  %v31_v23 = vld [vmem:[%s767_s0 + $0xa0] sm:$0xff]  ;;  %v32_v25 = vld [vmem:[%s767_s0 + $0xa8] sm:$0xff] }
   0x8   :  { %478 = vmatpush3.bf16.msra.mxu0 %v477_v7  ;;  %482 = vmatpush3.bf16.msra.mxu1 %v477_v7  ;;  %v19_v24 = vld [vmem:[%s767_s0 + $0x40] sm:$0xff]  ;;  %v20_v26 = vld [vmem:[%s767_s0 + $0x48] sm:$0xff]  ;;  %v33_v27 = vld [vmem:[%s767_s0 + $0xb0] sm:$0xff] }
   0x9   :  { %v21_v28 = vld [vmem:[%s767_s0 + $0x50] sm:$0xff]  ;;  %v34_v29 = vld [vmem:[%s767_s0 + $0xb8] sm:$0xff]  ;;  %v35_v31 = vld [vmem:[%s767_s0 + $0xc0] sm:$0xff] }
   0xa   :  { %v22_v30 = vld [vmem:[%s767_s0 + $0x58] sm:$0xff]  ;;  %v23_v32 = vld [vmem:[%s767_s0 + $0x60] sm:$0xff] }
   0xb   :  { %399 = vmatmul.mubr.msk.f32.vlgmr.msra.gmra.mrb[0].mxu0 %vm40_vm1, %v11_v8  ;;  %438 = vmatmul.mubr.msk.f32.vlgmr.msra.gmra.mrb[0].mxu1 %vm40_vm1, %v24_v9 }
   0xc   :  { %401 = vmatprep.mubr.msk.f32.mxu0 %vm487_vm0, %v488_v6  ;;  %440 = vmatprep.mubr.msk.f32.mxu1 %vm487_vm0, %v488_v6 }
   0xf   :  { %402 = vmatmul.mubr.msk.f32.gmra.mrb[2].mxu0 %vm40_vm1, %v12_v10  ;;  %441 = vmatmul.mubr.msk.f32.gmra.mrb[2].mxu1 %vm40_vm1, %v25_v11 }
  0x10   :  { %404 = vmatprep.mubr.msk.f32.mxu0 %vm487_vm0, %v488_v6  ;;  %443 = vmatprep.mubr.msk.f32.mxu1 %vm487_vm0, %v488_v6 }
  0x13   :  { %405 = vmatmul.mubr.msk.f32.gmra.mrb[4].mxu0 %vm40_vm1, %v13_v12  ;;  %444 = vmatmul.mubr.msk.f32.gmra.mrb[4].mxu1 %vm40_vm1, %v26_v13 }
  0x14   :  { %407 = vmatprep.mubr.msk.f32.mxu0 %vm487_vm0, %v488_v6  ;;  %446 = vmatprep.mubr.msk.f32.mxu1 %vm487_vm0, %v488_v6 }
  0x17   :  { %408 = vmatmul.mubr.msk.f32.gmra.mrb[6].mxu0 %vm40_vm1, %v14_v14  ;;  %447 = vmatmul.mubr.msk.f32.gmra.mrb[6].mxu1 %vm40_vm1, %v27_v15 }
  0x18   :  { %410 = vmatprep.mubr.msk.f32.mxu0 %vm487_vm0, %v488_v6  ;;  %449 = vmatprep.mubr.msk.f32.mxu1 %vm487_vm0, %v488_v6 }
  0x1b   :  { %411 = vmatmul.mubr.msk.f32.gmra.mrb[8].mxu0 %vm40_vm1, %v15_v16  ;;  %450 = vmatmul.mubr.msk.f32.gmra.mrb[8].mxu1 %vm40_vm1, %v28_v17 }
  0x1c   :  { %413 = vmatprep.mubr.msk.f32.mxu0 %vm487_vm0, %v488_v6  ;;  %452 = vmatprep.mubr.msk.f32.mxu1 %vm487_vm0, %v488_v6 }
  0x1f   :  { %414 = vmatmul.mubr.msk.f32.gmra.mrb[10].mxu0 %vm40_vm1, %v16_v18  ;;  %453 = vmatmul.mubr.msk.f32.gmra.mrb[10].mxu1 %vm40_vm1, %v29_v19 }
  0x20   :  { %416 = vmatprep.mubr.msk.f32.mxu0 %vm487_vm0, %v488_v6  ;;  %455 = vmatprep.mubr.msk.f32.mxu1 %vm487_vm0, %v488_v6 }
  0x23   :  { %417 = vmatmul.mubr.msk.f32.gmra.mrb[12].mxu0 %vm40_vm1, %v17_v20  ;;  %456 = vmatmul.mubr.msk.f32.gmra.mrb[12].mxu1 %vm40_vm1, %v30_v21 }
  0x24   :  { %419 = vmatprep.mubr.msk.f32.mxu0 %vm487_vm0, %v488_v6  ;;  %458 = vmatprep.mubr.msk.f32.mxu1 %vm487_vm0, %v488_v6 }
  0x27   :  { %420 = vmatmul.mubr.msk.f32.gmra.mrb[14].mxu0 %vm40_vm1, %v18_v22  ;;  %459 = vmatmul.mubr.msk.f32.gmra.mrb[14].mxu1 %vm40_vm1, %v31_v23 }
  0x28   :  { %422 = vmatprep.mubr.msk.f32.mxu0 %vm487_vm0, %v488_v6  ;;  %461 = vmatprep.mubr.msk.f32.mxu1 %vm487_vm0, %v488_v6 }
  0x2b   :  { %423 = vmatmul.mubr.msk.f32.gmra.mrb[16].mxu0 %vm40_vm1, %v19_v24  ;;  %462 = vmatmul.mubr.msk.f32.gmra.mrb[16].mxu1 %vm40_vm1, %v32_v25 }
  0x2c   :  { %425 = vmatprep.mubr.msk.f32.mxu0 %vm487_vm0, %v488_v6  ;;  %464 = vmatprep.mubr.msk.f32.mxu1 %vm487_vm0, %v488_v6 }
  0x2f   :  { %426 = vmatmul.mubr.msk.f32.gmra.mrb[18].mxu0 %vm40_vm1, %v20_v26  ;;  %465 = vmatmul.mubr.msk.f32.gmra.mrb[18].mxu1 %vm40_vm1, %v33_v27 }
  0x30   :  { %428 = vmatprep.mubr.msk.f32.mxu0 %vm487_vm0, %v488_v6  ;;  %467 = vmatprep.mubr.msk.f32.mxu1 %vm487_vm0, %v488_v6 }
  0x33   :  { %429 = vmatmul.mubr.msk.f32.gmra.mrb[20].mxu0 %vm40_vm1, %v21_v28  ;;  %468 = vmatmul.mubr.msk.f32.gmra.mrb[20].mxu1 %vm40_vm1, %v34_v29 }
  0x34   :  { %431 = vmatprep.mubr.msk.f32.mxu0 %vm487_vm0, %v488_v6  ;;  %470 = vmatprep.mubr.msk.f32.mxu1 %vm487_vm0, %v488_v6 }
  0x37   :  { %432 = vmatmul.mubr.msk.f32.gmra.mrb[22].mxu0 %vm40_vm1, %v22_v30  ;;  %471 = vmatmul.mubr.msk.f32.gmra.mrb[22].mxu1 %vm40_vm1, %v35_v31 }
  0x38   :  { %434 = vmatprep.mubr.msk.f32.mxu0 %vm487_vm0, %v488_v6 }
  0x3b   :  { %435 = vmatmul.mubr.msk.f32.gmra.mrb[24].mxu0 %vm40_vm1, %v23_v32 }
  0xde   :  { %v182_v33 = vpop.f32.mrb[0].mxu0  ;;  %v247_v34 = vpop.f32.mrb[0].mxu1 }
  0xdf   :  { %307 = vst.msk [vmem:[%s768_s2] sm:$0xff] %vm306_vm2, %v182_v33  ;;  %v400_v35 = vpop.f32.mrb[1].mxu0  ;;  %320 = vst.msk [vmem:[%s768_s2 + $0x68] sm:$0xff] %vm306_vm2, %v247_v34  ;;  %v439_v36 = vpop.f32.mrb[1].mxu1 }
  0xe2   :  { %v187_v37 = vpop.f32.mrb[2].mxu0  ;;  %v252_v38 = vpop.f32.mrb[2].mxu1 }
  0xe3   :  { %308 = vst.msk [vmem:[%s768_s2 + $0x8] sm:$0xff] %vm306_vm2, %v187_v37  ;;  %v403_v39 = vpop.f32.mrb[3].mxu0  ;;  %321 = vst.msk [vmem:[%s768_s2 + $0x70] sm:$0xff] %vm306_vm2, %v252_v38  ;;  %v442_v40 = vpop.f32.mrb[3].mxu1 }
  0xe6   :  { %v192_v41 = vpop.f32.mrb[4].mxu0  ;;  %v257_v42 = vpop.f32.mrb[4].mxu1 }
  0xe7   :  { %309 = vst.msk [vmem:[%s768_s2 + $0x10] sm:$0xff] %vm306_vm2, %v192_v41  ;;  %v406_v43 = vpop.f32.mrb[5].mxu0  ;;  %322 = vst.msk [vmem:[%s768_s2 + $0x78] sm:$0xff] %vm306_vm2, %v257_v42  ;;  %v445_v44 = vpop.f32.mrb[5].mxu1 }
  0xea   :  { %v197_v45 = vpop.f32.mrb[6].mxu0  ;;  %v262_v46 = vpop.f32.mrb[6].mxu1 }
  0xeb   :  { %310 = vst.msk [vmem:[%s768_s2 + $0x18] sm:$0xff] %vm306_vm2, %v197_v45  ;;  %v409_v47 = vpop.f32.mrb[7].mxu0  ;;  %323 = vst.msk [vmem:[%s768_s2 + $0x80] sm:$0xff] %vm306_vm2, %v262_v46  ;;  %v448_v48 = vpop.f32.mrb[7].mxu1 }
  0xee   :  { %v202_v49 = vpop.f32.mrb[8].mxu0  ;;  %v267_v50 = vpop.f32.mrb[8].mxu1 }
  0xef   :  { %311 = vst.msk [vmem:[%s768_s2 + $0x20] sm:$0xff] %vm306_vm2, %v202_v49  ;;  %v412_v51 = vpop.f32.mrb[9].mxu0  ;;  %324 = vst.msk [vmem:[%s768_s2 + $0x88] sm:$0xff] %vm306_vm2, %v267_v50  ;;  %v451_v52 = vpop.f32.mrb[9].mxu1 }
  0xf2   :  { %v207_v53 = vpop.f32.mrb[10].mxu0  ;;  %v272_v54 = vpop.f32.mrb[10].mxu1 }
  0xf3   :  { %312 = vst.msk [vmem:[%s768_s2 + $0x28] sm:$0xff] %vm306_vm2, %v207_v53  ;;  %v415_v55 = vpop.f32.mrb[11].mxu0  ;;  %325 = vst.msk [vmem:[%s768_s2 + $0x90] sm:$0xff] %vm306_vm2, %v272_v54  ;;  %v454_v56 = vpop.f32.mrb[11].mxu1 }
  0xf6   :  { %v212_v57 = vpop.f32.mrb[12].mxu0  ;;  %v277_v58 = vpop.f32.mrb[12].mxu1 }
  0xf7   :  { %313 = vst.msk [vmem:[%s768_s2 + $0x30] sm:$0xff] %vm306_vm2, %v212_v57  ;;  %v418_v59 = vpop.f32.mrb[13].mxu0  ;;  %326 = vst.msk [vmem:[%s768_s2 + $0x98] sm:$0xff] %vm306_vm2, %v277_v58  ;;  %v457_v60 = vpop.f32.mrb[13].mxu1 }
  0xfa   :  { %v217_v61 = vpop.f32.mrb[14].mxu0  ;;  %v282_v62 = vpop.f32.mrb[14].mxu1 }
  0xfb   :  { %314 = vst.msk [vmem:[%s768_s2 + $0x38] sm:$0xff] %vm306_vm2, %v217_v61  ;;  %v421_v63 = vpop.f32.mrb[15].mxu0  ;;  %327 = vst.msk [vmem:[%s768_s2 + $0xa0] sm:$0xff] %vm306_vm2, %v282_v62  ;;  %v460_v0 = vpop.f32.mrb[15].mxu1 }
  0xfe   :  { %v222_v1 = vpop.f32.mrb[16].mxu0  ;;  %v287_v2 = vpop.f32.mrb[16].mxu1 }
  0xff   :  { %315 = vst.msk [vmem:[%s768_s2 + $0x40] sm:$0xff] %vm306_vm2, %v222_v1  ;;  %v424_v3 = vpop.f32.mrb[17].mxu0  ;;  %328 = vst.msk [vmem:[%s768_s2 + $0xa8] sm:$0xff] %vm306_vm2, %v287_v2  ;;  %v463_v4 = vpop.f32.mrb[17].mxu1 }
 0x102   :  { %v227_v5 = vpop.f32.mrb[18].mxu0  ;;  %v292_v6 = vpop.f32.mrb[18].mxu1 }
 0x103   :  { %316 = vst.msk [vmem:[%s768_s2 + $0x48] sm:$0xff] %vm306_vm2, %v227_v5  ;;  %v427_v7 = vpop.f32.mrb[19].mxu0  ;;  %329 = vst.msk [vmem:[%s768_s2 + $0xb0] sm:$0xff] %vm306_vm2, %v292_v6  ;;  %v466_v8 = vpop.f32.mrb[19].mxu1 }
 0x106   :  { %v232_v9 = vpop.f32.mrb[20].mxu0  ;;  %v297_v10 = vpop.f32.mrb[20].mxu1 }
 0x107   :  { %317 = vst.msk [vmem:[%s768_s2 + $0x50] sm:$0xff] %vm306_vm2, %v232_v9  ;;  %v430_v11 = vpop.f32.mrb[21].mxu0  ;;  %330 = vst.msk [vmem:[%s768_s2 + $0xb8] sm:$0xff] %vm306_vm2, %v297_v10  ;;  %v469_v12 = vpop.f32.mrb[21].mxu1 }
 0x10a   :  { %v237_v13 = vpop.f32.mrb[22].mxu0  ;;  %v302_v14 = vpop.f32.mrb[22].mxu1 }
 0x10b   :  { %318 = vst.msk [vmem:[%s768_s2 + $0x58] sm:$0xff] %vm306_vm2, %v237_v13  ;;  %v433_v15 = vpop.f32.mrb[23].mxu0  ;;  %331 = vst.msk [vmem:[%s768_s2 + $0xc0] sm:$0xff] %vm306_vm2, %v302_v14  ;;  %v472_v16 = vpop.f32.mrb[23].mxu1 }
 0x10e   :  { %v242_v17 = vpop.f32.mrb[24].mxu0 }
 0x10f   :  { %319 = vst.msk [vmem:[%s768_s2 + $0x60] sm:$0xff] %vm306_vm2, %v242_v17  ;;  %v436_v18 = vpop.f32.mrb[25].mxu0 }

</bundles_post_ra>
